<compile_context>
chip_gen: v5e
topology: v5e:2x2
jax: 0.10.0
libtpu: 0.0.40
codegen_flags: <defaults>
</compile_context>

<pallas_src>
import jax
import jax.numpy as jnp
from jax import lax
from jax.experimental import pallas as pl
from jax.experimental.pallas import tpu as pltpu

LN_EPS = 1e-5  # PyTorch nn.LayerNorm default


def _mlp_ln_kernel(x_ref, w1_ref, w2_ref, p_ref, o_ref):
    """(x @ W1 + b1) -> ReLU -> (@ W2 + b2) -> LayerNorm for one row tile.

    x_ref : (TM, IN)  input rows (any float dtype; cast to bf16 for the MXU)
    w1_ref: (IN, H)   bf16      w2_ref: (H, H) bf16
    p_ref : (4, H)    f32 stacked [b1; b2; gamma; beta]
    o_ref : (TM, H)   bf16
    """
    x = x_ref[...].astype(jnp.bfloat16)
    p = p_ref[...]                                   # (4, H) f32
    b1, b2, gamma, beta = p[0:1, :], p[1:2, :], p[2:3, :], p[3:4, :]

    # Linear 1 + bias + ReLU (MXU bf16 matmul, f32 accumulate; f32 elementwise).
    h = jnp.dot(x, w1_ref[...], preferred_element_type=jnp.float32)
    h = jnp.maximum(h + b1, 0.0)                     # (TM, H) f32
    # Linear 2 + bias.
    y = jnp.dot(h.astype(jnp.bfloat16), w2_ref[...],
                preferred_element_type=jnp.float32)
    y = y + b2                                       # (TM, H) f32
    # LayerNorm over the feature (lane) axis, statistics in f32.
    mean = jnp.mean(y, axis=-1, keepdims=True)
    c = y - mean
    var = jnp.mean(c * c, axis=-1, keepdims=True)
    o_ref[...] = (c * lax.rsqrt(var + LN_EPS) * gamma + beta).astype(o_ref.dtype)


def _encode_branch(x, w1_bf16, w2_bf16, ln_params, *, block_rows=2048):
    """Run one MLP+LayerNorm branch over all rows of x via a 1-D row-tile grid."""
    rows, in_size = x.shape
    H = w2_bf16.shape[1]

    # Row tile: multiple of 16 (bf16 native (16,128) tile), capped at 4096 so the
    # double-buffered x/out tiles stay under v5e's 16 MiB scoped-VMEM default;
    # never larger than the (16-rounded) row count.
    tm = max(16, (min(int(block_rows), 4096) // 16) * 16)
    tm = min(tm, max(16, ((rows + 15) // 16) * 16))
    n_tiles = pl.cdiv(rows, tm)                      # non-dividing rows OK

    flops = 2 * rows * (in_size * H + H * H)
    bytes_accessed = (rows * in_size * x.dtype.itemsize      # input stream
                      + rows * H * 2                          # bf16 output
                      + (w1_bf16.size + w2_bf16.size) * 2
                      + ln_params.size * 4)

    return pl.pallas_call(
        _mlp_ln_kernel,
        out_shape=jax.ShapeDtypeStruct((rows, H), jnp.bfloat16),
        grid_spec=pltpu.PrefetchScalarGridSpec(
            num_scalar_prefetch=0,
            grid=(n_tiles,),
            in_specs=[
                pl.BlockSpec((tm, in_size), lambda i: (i, 0)),   # x tile (pipelined)
                pl.BlockSpec((in_size, H), lambda i: (0, 0)),    # W1 (resident)
                pl.BlockSpec((H, H), lambda i: (0, 0)),          # W2 (resident)
                pl.BlockSpec((4, H), lambda i: (0, 0)),          # b1/b2/gamma/beta
            ],
            out_specs=pl.BlockSpec((tm, H), lambda i: (i, 0)),
        ),
        compiler_params=pltpu.CompilerParams(
            dimension_semantics=("parallel",)),
        cost_estimate=pl.CostEstimate(
            flops=flops, transcendentals=rows, bytes_accessed=bytes_accessed),
    )(x, w1_bf16, w2_bf16, ln_params)


def _init_mlp_params(key, in_size, hidden_size, out_size):
    """Deterministic params matching the layers=2 instantiate_mlp structure."""
    k1, k2, k3, k4 = jax.random.split(key, 4)
    lim1 = 1.0 / jnp.sqrt(in_size)
    lim2 = 1.0 / jnp.sqrt(hidden_size)
    return {
        "w1": jax.random.uniform(k1, (in_size, hidden_size), jnp.float32, -lim1, lim1),
        "b1": jax.random.uniform(k2, (hidden_size,), jnp.float32, -lim1, lim1),
        "w2": jax.random.uniform(k3, (hidden_size, out_size), jnp.float32, -lim2, lim2),
        "b2": jax.random.uniform(k4, (out_size,), jnp.float32, -lim2, lim2),
        "gamma": jnp.ones((out_size,), jnp.float32),
        "beta": jnp.zeros((out_size,), jnp.float32),
    }


class EncoderPallas:
    """JAX/Pallas equivalent of the PyTorch Encoder (layers=2, dropout=0)."""

    def __init__(self, key, edge_input_size=128, node_input_size=128, hidden_size=128):
        k_nb, k_emb, k_ewb = jax.random.split(key, 3)
        self.nb = _init_mlp_params(k_nb, node_input_size, hidden_size, hidden_size)
        self.emb = _init_mlp_params(k_emb, edge_input_size * 2, hidden_size, hidden_size)
        self.ewb = _init_mlp_params(k_ewb, edge_input_size, hidden_size, hidden_size)
        self.hidden = hidden_size

        # Hoisted (per-init, not per-call): bf16 weights + stacked f32 params.
        def pack(p):
            return (p["w1"].astype(jnp.bfloat16),
                    p["w2"].astype(jnp.bfloat16),
                    jnp.stack([p["b1"], p["b2"], p["gamma"], p["beta"]]))  # (4, H)

        self._nb_packed = pack(self.nb)
        self._emb_packed = pack(self.emb)
        self._ewb_packed = pack(self.ewb)

    def __call__(self, node_attr, edge_mesh_attr, edge_world_attr, *, block_rows=2048):
        node_ = _encode_branch(node_attr, *self._nb_packed, block_rows=block_rows)
        edge_mesh_ = _encode_branch(edge_mesh_attr, *self._emb_packed,
                                    block_rows=block_rows)
        edge_world_ = _encode_branch(edge_world_attr, *self._ewb_packed,
                                     block_rows=block_rows)
        # TODO(synk): torch_geometric Data / edge_index passthrough is pure
        # bookkeeping; returned here as a dict.
        return {"x": node_, "edge_attr": edge_mesh_, "edge_world_attr": edge_world_}


def _reference_mlp(x, p):
    """Pure-JAX reference with the same bf16-stream / f32-accumulate recipe."""
    xb = x.astype(jnp.bfloat16)
    h = jnp.dot(xb, p["w1"].astype(jnp.bfloat16),
                preferred_element_type=jnp.float32) + p["b1"]
    h = jnp.maximum(h, 0.0)
    y = jnp.dot(h.astype(jnp.bfloat16), p["w2"].astype(jnp.bfloat16),
                preferred_element_type=jnp.float32) + p["b2"]
    mean = y.mean(-1, keepdims=True)
    var = ((y - mean) ** 2).mean(-1, keepdims=True)
    return (y - mean) / jnp.sqrt(var + LN_EPS) * p["gamma"] + p["beta"]


if __name__ == "__main__":
    key = jax.random.PRNGKey(0)
    k_param, k_node, k_emesh, k_eworld = jax.random.split(key, 4)

    # Module defaults: edge/node input = 128, hidden = 128 (lane-dense features).
    edge_input_size = 128
    node_input_size = 128
    hidden_size = 128
    n_nodes = 400
    n_mesh_edges = 520
    n_world_edges = 300

    node_attr = jax.random.normal(k_node, (n_nodes, node_input_size), jnp.float32)
    edge_mesh_attr = jax.random.normal(
        k_emesh, (n_mesh_edges, 2 * edge_input_size), jnp.float32)
    edge_world_attr = jax.random.normal(
        k_eworld, (n_world_edges, edge_input_size), jnp.float32)

    enc = EncoderPallas(k_param, edge_input_size, node_input_size, hidden_size)
    # Small row tile for the toy test so several grid steps (and partial last
    # tiles) are exercised; use the default 2048 at real scale.
    out = enc(node_attr, edge_mesh_attr, edge_world_attr, block_rows=128)
    out = jax.block_until_ready(out)

    # Correctness check against a pure-JAX reference using the same numerics
    # (bf16 stream / f32 accumulate); kernel output is bf16 by design.
    ref_x = _reference_mlp(node_attr, enc.nb)
    ref_em = _reference_mlp(edge_mesh_attr, enc.emb)
    ref_ew = _reference_mlp(edge_world_attr, enc.ewb)

    assert out["x"].shape == (n_nodes, hidden_size)
    assert out["edge_attr"].shape == (n_mesh_edges, hidden_size)
    assert out["edge_world_attr"].shape == (n_world_edges, hidden_size)
    assert out["x"].dtype == jnp.bfloat16
    assert jnp.allclose(out["x"].astype(jnp.float32), ref_x, atol=3e-2, rtol=3e-2)
    assert jnp.allclose(out["edge_attr"].astype(jnp.float32), ref_em,
                        atol=3e-2, rtol=3e-2)
    assert jnp.allclose(out["edge_world_attr"].astype(jnp.float32), ref_ew,
                        atol=3e-2, rtol=3e-2)

    print("KERNEL_OK")
</pallas_src>

<mosaic_0001>
module attributes {stable_mosaic.version = 11 : i64} {
  func.func @_mlp_ln_kernel(%arg0: i32, %arg1: memref<128x128xf32, #tpu.memory_space<vmem>>, %arg2: memref<128x128xbf16, #tpu.memory_space<vmem>>, %arg3: memref<128x128xbf16, #tpu.memory_space<vmem>>, %arg4: memref<4x128xf32, #tpu.memory_space<vmem>>, %arg5: memref<128x128xbf16, #tpu.memory_space<vmem>>) attributes {dimension_semantics = [#tpu.dimension_semantics<parallel>], iteration_bounds = array<i64: 4>, scalar_prefetch = 0 : i64, scratch_operands = 0 : i64, tpu.core_type = #tpu.core_type<tc>, window_params = [{transform_indices = @transform_0, window_bounds = array<i64: 128, 128>}, {pipeline_mode = #tpu.pipeline_mode<synchronous>, transform_indices = @transform_1, window_bounds = array<i64: 128, 128>}, {pipeline_mode = #tpu.pipeline_mode<synchronous>, transform_indices = @transform_2, window_bounds = array<i64: 128, 128>}, {pipeline_mode = #tpu.pipeline_mode<synchronous>, transform_indices = @transform_3, window_bounds = array<i64: 4, 128>}, {transform_indices = @transform_4, window_bounds = array<i64: 128, 128>}]} {
    %c0 = arith.constant 0 : index
    %c0_0 = arith.constant 0 : index
    %0 = vector.load %arg1[%c0, %c0_0] : memref<128x128xf32, #tpu.memory_space<vmem>>, vector<128x128xf32>
    %1 = arith.truncf %0 : vector<128x128xf32> to vector<128x128xbf16>
    %c0_1 = arith.constant 0 : index
    %c0_2 = arith.constant 0 : index
    %2 = vector.load %arg4[%c0_1, %c0_2] : memref<4x128xf32, #tpu.memory_space<vmem>>, vector<4x128xf32>
    %3 = vector.extract_strided_slice %2 {offsets = [0, 0], sizes = [1, 128], strides = [1, 1]} : vector<4x128xf32> to vector<1x128xf32>
    %4 = vector.extract_strided_slice %2 {offsets = [1, 0], sizes = [1, 128], strides = [1, 1]} : vector<4x128xf32> to vector<1x128xf32>
    %5 = vector.extract_strided_slice %2 {offsets = [2, 0], sizes = [1, 128], strides = [1, 1]} : vector<4x128xf32> to vector<1x128xf32>
    %6 = vector.extract_strided_slice %2 {offsets = [3, 0], sizes = [1, 128], strides = [1, 1]} : vector<4x128xf32> to vector<1x128xf32>
    %c0_3 = arith.constant 0 : index
    %c0_4 = arith.constant 0 : index
    %7 = vector.load %arg2[%c0_3, %c0_4] : memref<128x128xbf16, #tpu.memory_space<vmem>>, vector<128x128xbf16>
    %cst = arith.constant dense<0.000000e+00> : vector<128x128xf32>
    %8 = tpu.matmul %1, %7, %cst {dimension_numbers = #tpu.dot_dimension_numbers<[1], [0], [0], [1], [0, 0, 1, 1], [], []>} : vector<128x128xbf16>, vector<128x128xbf16>, vector<128x128xf32> -> vector<128x128xf32>
    %9 = vector.broadcast %3 : vector<1x128xf32> to vector<128x128xf32>
    %10 = arith.addf %8, %9 : vector<128x128xf32>
    %cst_5 = arith.constant 0.000000e+00 : f32
    %11 = vector.broadcast %cst_5 : f32 to vector<128x128xf32>
    %12 = arith.maximumf %10, %11 : vector<128x128xf32>
    %13 = arith.truncf %12 : vector<128x128xf32> to vector<128x128xbf16>
    %c0_6 = arith.constant 0 : index
    %c0_7 = arith.constant 0 : index
    %14 = vector.load %arg3[%c0_6, %c0_7] : memref<128x128xbf16, #tpu.memory_space<vmem>>, vector<128x128xbf16>
    %cst_8 = arith.constant dense<0.000000e+00> : vector<128x128xf32>
    %15 = tpu.matmul %13, %14, %cst_8 {dimension_numbers = #tpu.dot_dimension_numbers<[1], [0], [0], [1], [0, 0, 1, 1], [], []>} : vector<128x128xbf16>, vector<128x128xbf16>, vector<128x128xf32> -> vector<128x128xf32>
    %16 = vector.broadcast %4 : vector<1x128xf32> to vector<128x128xf32>
    %17 = arith.addf %15, %16 : vector<128x128xf32>
    %cst_9 = arith.constant dense<0.000000e+00> : vector<128xf32>
    %18 = vector.multi_reduction <add>, %17, %cst_9 [1] : vector<128x128xf32> to vector<128xf32>
    %19 = vector.shape_cast %18 : vector<128xf32> to vector<128x1xf32>
    %cst_10 = arith.constant 1.280000e+02 : f32
    %20 = vector.broadcast %cst_10 : f32 to vector<128x1xf32>
    %21 = arith.divf %19, %20 : vector<128x1xf32>
    %22 = vector.broadcast %21 : vector<128x1xf32> to vector<128x128xf32>
    %23 = arith.subf %17, %22 : vector<128x128xf32>
    %24 = arith.mulf %23, %23 : vector<128x128xf32>
    %cst_11 = arith.constant dense<0.000000e+00> : vector<128xf32>
    %25 = vector.multi_reduction <add>, %24, %cst_11 [1] : vector<128x128xf32> to vector<128xf32>
    %26 = vector.shape_cast %25 : vector<128xf32> to vector<128x1xf32>
    %cst_12 = arith.constant 1.280000e+02 : f32
    %27 = vector.broadcast %cst_12 : f32 to vector<128x1xf32>
    %28 = arith.divf %26, %27 : vector<128x1xf32>
    %cst_13 = arith.constant 9.99999974E-6 : f32
    %29 = vector.broadcast %cst_13 : f32 to vector<128x1xf32>
    %30 = arith.addf %28, %29 : vector<128x1xf32>
    %31 = math.rsqrt %30 : vector<128x1xf32>
    %32 = vector.broadcast %31 : vector<128x1xf32> to vector<128x128xf32>
    %33 = arith.mulf %23, %32 : vector<128x128xf32>
    %34 = vector.broadcast %5 : vector<1x128xf32> to vector<128x128xf32>
    %35 = arith.mulf %33, %34 : vector<128x128xf32>
    %36 = vector.broadcast %6 : vector<1x128xf32> to vector<128x128xf32>
    %37 = arith.addf %35, %36 : vector<128x128xf32>
    %38 = arith.truncf %37 : vector<128x128xf32> to vector<128x128xbf16>
    %c0_14 = arith.constant 0 : index
    %c0_15 = arith.constant 0 : index
    %39 = vector.load %arg5[%c0_14, %c0_15] : memref<128x128xbf16, #tpu.memory_space<vmem>>, vector<128x128xbf16>
    tpu.vector_store %arg5[%c0_14, %c0_15], %38 {strides = array<i32>} : memref<128x128xbf16, #tpu.memory_space<vmem>>, vector<128x128xbf16>,
    return
  }
  func.func @transform_0(%arg0: i32) -> (i32, i32) {
    %c0_i32 = arith.constant 0 : i32
    %c0_i32_0 = arith.constant 0 : i32
    return %arg0, %c0_i32 : i32, i32
  }
  func.func @transform_1(%arg0: i32) -> (i32, i32) {
    %c0_i32 = arith.constant 0 : i32
    %c0_i32_0 = arith.constant 0 : i32
    %c0_i32_1 = arith.constant 0 : i32
    return %c0_i32, %c0_i32_0 : i32, i32
  }
  func.func @transform_2(%arg0: i32) -> (i32, i32) {
    %c0_i32 = arith.constant 0 : i32
    %c0_i32_0 = arith.constant 0 : i32
    %c0_i32_1 = arith.constant 0 : i32
    return %c0_i32, %c0_i32_0 : i32, i32
  }
  func.func @transform_3(%arg0: i32) -> (i32, i32) {
    %c0_i32 = arith.constant 0 : i32
    %c0_i32_0 = arith.constant 0 : i32
    %c0_i32_1 = arith.constant 0 : i32
    return %c0_i32, %c0_i32_0 : i32, i32
  }
  func.func @transform_4(%arg0: i32) -> (i32, i32) {
    %c0_i32 = arith.constant 0 : i32
    %c0_i32_0 = arith.constant 0 : i32
    return %arg0, %c0_i32 : i32, i32
  }
}

</mosaic_0001>

<bundles_post_ra>
// kernel: tpu_custom_call.1
= control target key start
LH: loop header
LB: loop body
LE: loop exit
PB: predicated region body
PF: predicated region fallthrough
CT: control target
= control target key end

     0   :  { %9 = vsyncpa [#allocation3], 0  ;;  %s2138_s0 = inlined_call_operand.hbm [shape: f32[400,128], index: 0, kind: input, shape index: {}]   ;;  %s2139_s1 = inlined_call_operand.hbm [shape: bf16[128,128], index: 1, kind: input, shape index: {}]   ;;  %s2140_s2 = inlined_call_operand.hbm [shape: bf16[128,128], index: 2, kind: input, shape index: {}]   ;;  %s2141_s3 = inlined_call_operand.hbm [shape: f32[4,128], index: 3, kind: input, shape index: {}]   ;;  %s2142_s4 = inlined_call_operand.hbm [shape: bf16[400,128], index: 4, kind: output, shape index: {}]  }
   0x1   :  { %11 = vsyncpa [#allocation3 + $0x1], 0 }
   0x2   :  { %12 = vsyncpa [#allocation6], 0 }
   0x3   :  { %13 = vsyncpa [#allocation9], 0 }
   0x4   :  { %14 = vsyncpa [#allocation4], 0 }
   0x5   :  { %16 = vsyncpa [#allocation4 + $0x1], 0  ;;  %s1615_s15 = smov 0   ;;  %s1617_s16 = smov 0  }
   0x6   :  { %s1619_s17 = smov 0   ;;  %s1621_s18 = smov 0  }
   0x7 LB: > { %s1636_s19 = sadd.s32 4294967295, %s1576_s18   ;;  %s1078_s20 = sadd.s32 4294967294, %s1576_s18   ;;  %s1576_s18 = sphi %s1621_s18, %s2162_s18   ;;  %s1572_s17 = sphi %s1619_s17, %s2161_s17   ;;  %s1568_s16 = sphi %s1617_s16, %s2160_s16   ;;  %s1564_s15 = sphi %s1615_s15, %s2159_s15  }
   0x8   : > { %s1640_s21 = sadd.s32 1, %s1576_s18   ;;  %s29_s22 = sadd.s32 1, %s1572_s17 }
   0x9   : > { %s26_s23 = ssub.s32 %s1576_s18, %s1640_s21  ;;  %p36_p0 = scmp.ne.s32.totalorder %s1572_s17, %s1568_s16 }
   0xa   : > { %p27_p1 = scmp.eq.s32.totalorder %s26_s23, 0  ;;  %p37_p2 = scmp.eq.s32.totalorder %s1576_s18, 0 }
   0xb   : > { %p42_p3 = scmp.ne.s32.totalorder %s1568_s16, %s1564_s15  ;;  %p2144_p4 = scmp.eq.s32.totalorder %s1636_s19, 0 }
   0xc   : > { %s1652_s24 = scalar_select %p27_p1, %s1572_s17, %s29_s22  }
   0xd   : > { %p1654_p5 = por %p37_p2, %p36_p0  ;;  %p1660_p6 = por %p2144_p4, %p42_p3 }
   0xe   : > { %p129_p7 = scmp.eq.s32.totalorder %s1636_s19, 3  ;;  %p135_p8 = scmp.eq.s32.totalorder %s1078_s20, 3 }
   0xf   : > { %p1079_p9 = scmp.ge.s32.totalorder %s1576_s18, 1  ;;  %p142_p10 = scmp.lt.s32.totalorder %s1576_s18, 5 }
  0x10   : > { %p1667_p11 = por %p129_p7, %p36_p0  ;;  %p1671_p12 = por %p135_p8, %p42_p3 }
  0x11   : > { %p1675_p13 = pnand %p1079_p9, %p142_p10  ;;  %s153_s6 = sshll.u32 %s2139_s1, 4  ;;  %s154_s6 = int_to_ptr.hbm [resolvable:$true] %s153_s6 }
  0x12   : > { %s2148_s28 = scalar_select %p1671_p12, 1, 0 }
  0x13   : > { %p1265_p1 = pneg %p1675_p13  ;;  %s1578_s7 = smov [#allocation5]  }
  0x14   : > { %s155_s8 = sshll.u32 %s1578_s7, 4  ;;  %s167_s12 = sshll.u32 %s2140_s2, 4  ;;  %s156_s8 = int_to_ptr.vmem [resolvable:$true] %s155_s8  ;;  %s168_s12 = int_to_ptr.hbm [resolvable:$true] %s167_s12 }
  0x15   : > { %p1686_p0 = pnand %p1265_p1, %p2144_p4  ;;  %s1579_s13 = smov 64  }
  0x16   : > { %s1580_s14 = smov 4   ;;  %s182_s23 = sshll.u32 %s2141_s3, 4  ;;  %s183_s23 = int_to_ptr.hbm [resolvable:$true] %s182_s23 }
  0x17   : > { %1268 = dma.hbm_to_vmem [thread:$0]  (!%p1686_p0), %s154_s6, 1024, %s156_s8, [#allocation6], %s1579_s13, %s1579_s13, %s1580_s14  }
  0x18   : > { %s1581_s30 = smov [#allocation7]   ;;  %s1582_s7 = smov [#allocation8]  }
  0x19   : > { %s169_s5 = sshll.u32 %s1581_s30, 4  ;;  %s184_s10 = sshll.u32 %s1582_s7, 4  ;;  %s170_s5 = int_to_ptr.vmem [resolvable:$true] %s169_s5  ;;  %s185_s10 = int_to_ptr.vmem [resolvable:$true] %s184_s10 }
  0x1a   : > { %1271 = dma.hbm_to_vmem [thread:$0]  (!%p1686_p0), %s168_s12, 1024, %s170_s5, [#allocation6], %s1579_s13, %s1579_s13, %s1580_s14  }
  0x1b   : > { %1274 = dma.hbm_to_vmem [thread:$0]  (!%p1686_p0), %s183_s23, 64, %s185_s10, [#allocation9]  }
  0x1c   : > { %p1083_p2 = scmp.ge.s32.totalorder %s1576_s18, 4 }
  0x1e   : > { %191 = sbr.rel (%p1083_p2) target bundleno = 72 (0x48), region = 28 }
  0x23   : > { %194 = sbr.rel (!%p1654_p5) target bundleno = 72 (0x48), region = 32  ;;  %s195_s6 = sand.u32 (%p1654_p5), 1, %s1572_s17  }
  0x24   : > { %s1085_s8 = sshll.u32 (%p1654_p5), %s1576_s18, 4  ;;  %s1084_s11 = sshll.u32 (%p1654_p5), %s195_s6, 7 }
  0x25   : > { %s201_s20 = ssub.s32 (%p1654_p5), 50, %s1085_s8  ;;  %s1710_s14 = scalar_lea.sflag (%p1654_p5), [#allocation3], %s195_s6 }
  0x26   : > { %p202_p3 = scmp.lt.s32.totalorder (%p1654_p5), %s201_s20, 16  ;;  %s199_s22 = scalar_lea.vmem (%p1654_p5), [#allocation2], %s1084_s11 }
  0x28   : > { %s2164_s20 = smov (!%p202_p3, %s201_s20), 16 }
  0x29   : > { %s1086_s12 = sshll.u32 %s2164_s20, 3 }
  0x2a   : > { %s205_s13 = ssub.s32 128, %s1086_s12 }
  0x2b   : > { %s206_s9 = sshll.u32 %s205_s13, 4 }
  0x2c   : > { %207 = vsyncadd %s1710_s14, %s206_s9  ;;  %p1713_p5 = scmp.ne.s32.totalorder %s1086_s12, 0  ;;  %s1170_s23 = sshll.u32 %s1576_s18, 7 }
  0x2d   : > { %s210_s7 = scalar_lea.hbm %s2138_s0, %s1170_s23  ;;  %s1721_s10 = sshll.u32 %s199_s22, 4  ;;  %s215_s10 = int_to_ptr.vmem [resolvable:$true] %s1721_s10 }
  0x2e   : > { %s212_s6 = sshll.u32 %s210_s7, 4  ;;  %s2143_s8 = sshll.u32 %s2164_s20, 7  ;;  %s1724_s6 = int_to_ptr.hbm [resolvable:$true] %s212_s6 }
  0x2f   : > { %s1452_s11 = sshra.s32 %s1724_s6, 4  ;;  %s1454_s12 = sshrl.u32 %s2143_s8, 4  ;;  %s1453_s11 = int_to_ptr.hbm [resolvable:$true] %s1452_s11 }
  0x30   : > { %s1459_s13 = scalar_lea.hbm %s1453_s11, %s1454_s12  ;;  %s1463_s22 = scalar_lea.hbm %s2138_s0, 400 }
  0x31   : > { %p1460_p7 = scmp.ne.s32.totalorder %s1453_s11, %s1459_s13  ;;  %p1464_p10 = scmp.lt.s32.totalorder %s1453_s11, %s2138_s0 }
  0x32   : > { %p1465_p1 = scmp.lt.s32.totalorder %s1463_s22, %s1459_s13 }
  0x33   : > { %p1461_p8 = pnand %p1460_p7, %p1713_p5 }
  0x34   : > { %p1466_p0 = por %p1465_p1, %p1464_p10 }
  0x35   : > { %p1462_p9 = pneg %p1461_p8 }
  0x37   : > { %p1467_p2 = pnand %p1466_p0, %p1462_p9 }
  0x39   : > { %1470 = shalt.err (!%p1467_p2)
}
  0x3a   : > { %s1471_s7 = sshra.s32 %s215_s10, 4  ;;  %s1583_s9 = smov [#allocation2]   ;;  %s1472_s7 = int_to_ptr.vmem [resolvable:$true] %s1471_s7 }
  0x3b   : > { %s1478_s8 = scalar_lea.vmem %s1472_s7, %s1454_s12  ;;  %s1482_s23 = scalar_lea.vmem %s1583_s9, 256 }
  0x3c   : > { %p1479_p3 = scmp.ne.s32.totalorder %s1472_s7, %s1478_s8  ;;  %p1484_p4 = scmp.lt.s32.totalorder %s1482_s23, %s1478_s8 }
  0x3e   : > { %p1480_p7 = pnand %p1479_p3, %p1713_p5 }
  0x40   : > { %p1481_p8 = pneg %p1480_p7 }
  0x42   : > { %p1486_p12 = pnand %p1484_p4, %p1481_p8 }
  0x44   : > { %1489 = shalt.err (!%p1486_p12)
}
  0x45   : > { %s1584_s11 = smov 128   ;;  %s1585_s13 = smov 8  }
  0x46   : > { %s2152_s22 = sshll.u32 %s2164_s20, 7 }
  0x47   : > { %220 = dma.hbm_to_vmem [thread:$0]  (%p1713_p5), %s1724_s6, %s2152_s22, %s215_s10, %s1710_s14, %s1584_s11, %s1584_s11, %s1585_s13  }
  0x48 PF: > { %226 = sbr.rel (%p1675_p13) target bundleno = 753 (0x2f1), region = 36  ;;  %s1753_s8 = sand.u32 (!%p1675_p13), 1, %s1568_s16  }
  0x49   : > { %s1092_s12 = sshll.u32 (!%p1675_p13), %s1753_s8, 7  ;;  %s229_s30 = scalar_lea.sflag (!%p1675_p13), [#allocation3], %s1753_s8 }
  0x4a   : > { %s1757_s5 = scalar_lea.vmem (!%p1675_p13), [#allocation2], %s1092_s12 }
  0x4d   : > { %1547 = dma.done.wait (%p1660_p6), %s229_s30, 2048  }
  0x4e   : > { %1549 = vsyncadd (%p1660_p6), %s229_s30, 4294965248  ;;  %p2153_p4 = scmp.eq.s32.totalorder %s1636_s19, 0 }
  0x50   : > { %1551 = dma.done.wait (%p2153_p4), [#allocation6], 2048   ;;  %p2154_p12 = pmov %p2153_p4 }
  0x51   : > { %p2155_p13 = pmov %p2153_p4 }
  0x52   : > { %1553 = vsyncadd (%p2154_p12), [#allocation6], 4294965248 }
  0x53   : > { %1555 = dma.done.wait (%p2155_p13), [#allocation9], 64   ;;  %p2156_p5 = pmov %p2153_p4 }
  0x54   : > { %v1178_v0 = vld [vmem:[#allocation5 + $0x38] sm:$0xff]  ;;  %v1177_v1 = vld [vmem:[#allocation5 + $0x30] sm:$0xff]  ;;  %v1176_v2 = vld [vmem:[#allocation5 + $0x28] sm:$0xff]  ;;  %s1096_s26 = sshll.u32 %s1753_s8, 6  ;;  %s954_s20 = scalar_lea.sflag [#allocation4], %s1753_s8 }
  0x55   : > { %1557 = vsyncadd (%p2156_p5), [#allocation9], 4294967232  ;;  %373 = vmatpush.bf16.msra.mxu0 %v1178_v0  ;;  %1235 = vmatpush.bf16.msra.mxu2 %v1178_v0  ;;  %v1175_v3 = vld [vmem:[#allocation5 + $0x20] sm:$0xff]  ;;  %v1174_v4 = vld [vmem:[#allocation5 + $0x18] sm:$0xff]  ;;  %s1956_s29 = scalar_lea.vmem [#allocation10], %s1096_s26  ;;  %s1162_s14 = sshll.u32 (%p1667_p11), %s1636_s19, 4 }
  0x56   : > { %v1173_v5 = vld [vmem:[#allocation5 + $0x10] sm:$0xff]  ;;  %v1172_v6 = vld [vmem:[#allocation5 + $0x8] sm:$0xff]  ;;  %v1171_v7 = vld [vmem:[#allocation5] sm:$0xff]  ;;  %s962_s25 = ssub.s32 (%p1667_p11), 50, %s1162_s14 }
  0x57   : > { %v283_v8 = vld [vmem:[%s1757_s5] sm:$0xff]  ;;  %v284_v9 = vld [vmem:[%s1757_s5 + $0x8] sm:$0xff]  ;;  %v285_v14 = vld [vmem:[%s1757_s5 + $0x10] sm:$0xff]  ;;  %p963_p6 = scmp.lt.s32.totalorder (%p1667_p11), %s962_s25, 16 }
  0x58   : > { %v291_v10 = vld [vmem:[%s1757_s5 + $0x40] sm:$0xff]  ;;  %v292_v11 = vld [vmem:[%s1757_s5 + $0x48] sm:$0xff]  ;;  %v299_v12 = vpack.c.bf16 %v284_v9, %v283_v8  ;;  %v286_v15 = vld [vmem:[%s1757_s5 + $0x18] sm:$0xff] }
  0x59   : > { %374 = vmatpush.bf16.msra.mxu0 %v1177_v1  ;;  %1236 = vmatpush.bf16.msra.mxu2 %v1177_v1  ;;  %v303_v13 = vpack.c.bf16 %v292_v11, %v291_v10  ;;  %v293_v16 = vld [vmem:[%s1757_s5 + $0x50] sm:$0xff]  ;;  %v294_v17 = vld [vmem:[%s1757_s5 + $0x58] sm:$0xff]  ;;  %v300_v18 = vpack.c.bf16 %v286_v15, %v285_v14  ;;  %v1184_v22 = vld [vmem:[#allocation7 + $0x28] sm:$0xff] }
  0x5a   : > { %v304_v19 = vpack.c.bf16 %v294_v17, %v293_v16  ;;  %v1186_v20 = vld [vmem:[#allocation7 + $0x38] sm:$0xff]  ;;  %v1185_v21 = vld [vmem:[#allocation7 + $0x30] sm:$0xff]  ;;  %v287_v23 = vld [vmem:[%s1757_s5 + $0x20] sm:$0xff] }
  0x5b   : > { %511 = vmatpush.bf16.msra.mxu1 %v1186_v20  ;;  %1243 = vmatpush.bf16.msra.mxu3 %v1186_v20  ;;  %v288_v24 = vld [vmem:[%s1757_s5 + $0x28] sm:$0xff]  ;;  %v295_v25 = vld [vmem:[%s1757_s5 + $0x60] sm:$0xff]  ;;  %v289_v30 = vld [vmem:[%s1757_s5 + $0x30] sm:$0xff] }
  0x5c   : > { %v296_v26 = vld [vmem:[%s1757_s5 + $0x68] sm:$0xff]  ;;  %v1183_v27 = vld [vmem:[#allocation7 + $0x20] sm:$0xff]  ;;  %v301_v28 = vpack.c.bf16 %v288_v24, %v287_v23  ;;  %v290_v31 = vld [vmem:[%s1757_s5 + $0x38] sm:$0xff] }
  0x5d   : > { %375 = vmatpush.bf16.msra.mxu0 %v1176_v2  ;;  %1237 = vmatpush.bf16.msra.mxu2 %v1176_v2  ;;  %v305_v29 = vpack.c.bf16 %v296_v26, %v295_v25  ;;  %v297_v32 = vld [vmem:[%s1757_s5 + $0x70] sm:$0xff]  ;;  %v298_v33 = vld [vmem:[%s1757_s5 + $0x78] sm:$0xff]  ;;  %v302_v34 = vpack.c.bf16 %v290_v31, %v289_v30  ;;  %v1180_v38 = vld [vmem:[#allocation7 + $0x8] sm:$0xff] }
  0x5e   : > { %v306_v35 = vpack.c.bf16 %v298_v33, %v297_v32  ;;  %v1182_v36 = vld [vmem:[#allocation7 + $0x18] sm:$0xff]  ;;  %v1181_v37 = vld [vmem:[#allocation7 + $0x10] sm:$0xff]  ;;  %v1179_v39 = vld [vmem:[#allocation7] sm:$0xff] }
  0x5f   : > { %512 = vmatpush.bf16.msra.mxu1 %v1185_v21  ;;  %1244 = vmatpush.bf16.msra.mxu3 %v1185_v21  ;;  %v1787_v40 = vld [vmem:[#allocation8] sm:$0xf] }
  0x60   : > { %v324_v42 = vperm.slane %v1787_v40, 0 }
  0x61   : > { %376 = vmatpush.bf16.msra.mxu0 %v1175_v3  ;;  %1238 = vmatpush.bf16.msra.mxu2 %v1175_v3 }
  0x63   : > { %513 = vmatpush.bf16.msra.mxu1 %v1184_v22  ;;  %1245 = vmatpush.bf16.msra.mxu3 %v1184_v22 }
  0x65   : > { %377 = vmatpush.bf16.msra.mxu0 %v1174_v4  ;;  %1239 = vmatpush.bf16.msra.mxu2 %v1174_v4 }
  0x67   : > { %514 = vmatpush.bf16.msra.mxu1 %v1183_v27  ;;  %1246 = vmatpush.bf16.msra.mxu3 %v1183_v27 }
  0x69   : > { %378 = vmatpush.bf16.msra.mxu0 %v1173_v5  ;;  %1240 = vmatpush.bf16.msra.mxu2 %v1173_v5 }
  0x6b   : > { %515 = vmatpush.bf16.msra.mxu1 %v1182_v36  ;;  %1247 = vmatpush.bf16.msra.mxu3 %v1182_v36 }
  0x6d   : > { %379 = vmatpush.bf16.msra.mxu0 %v1172_v6  ;;  %1241 = vmatpush.bf16.msra.mxu2 %v1172_v6 }
  0x6f   : > { %516 = vmatpush.bf16.msra.mxu1 %v1181_v37  ;;  %1248 = vmatpush.bf16.msra.mxu3 %v1181_v37 }
  0x71   : > { %380 = vmatpush.bf16.msra.mxu0 %v1171_v7  ;;  %1242 = vmatpush.bf16.msra.mxu2 %v1171_v7 }
  0x73   : > { %517 = vmatpush.bf16.msra.mxu1 %v1180_v38  ;;  %1249 = vmatpush.bf16.msra.mxu3 %v1180_v38 }
  0x74   : > { %381 = vmatmul.bf16.vlgmr.msra.gmra.mxu0 %v299_v12  ;;  %401 = vmatmul.bf16.vlgmr.msra.gmra.mxu2 %v303_v13 }
  0x77   : > { %518 = vmatpush.bf16.msra.mxu1 %v1179_v39  ;;  %1250 = vmatpush.bf16.msra.mxu3 %v1179_v39 }
  0x84   : > { %386 = vmatmul.bf16.gmra.mxu0 %v300_v18  ;;  %406 = vmatmul.bf16.gmra.mxu2 %v304_v19 }
  0x94   : > { %391 = vmatmul.bf16.gmra.mxu0 %v301_v28  ;;  %411 = vmatmul.bf16.gmra.mxu2 %v305_v29 }
  0xa4   : > { %396 = vmatmul.bf16.gmra.mxu0 %v302_v34  ;;  %416 = vmatmul.bf16.gmra.mxu2 %v306_v35  ;;  %v462_v34 = vperm.slane %v1787_v40, 1 }
  0xf1   : > { %v382_v41 = vpop.f32.mrf.mxu0 }
  0xf2   : > { %v383_v44 = vadd.f32 %v382_v41, %v324_v42 }
  0xf4   : > { %v422_v47 = vmax.f32 %v383_v44, 0.0 }
  0xf7   : > { %v402_v43 = vpop.f32.mrf.mxu2 }
  0xf8   : > { %v403_v49 = vadd.f32 %v402_v43, %v324_v42 }
  0xf9   : > { %v384_v45 = vpop.f32.mrf.mxu0 }
  0xfa   : > { %v385_v46 = vadd.f32 %v384_v45, %v324_v42  ;;  %v430_v54 = vmax.f32 %v403_v49, 0.0 }
  0xfc   : > { %v423_v48 = vmax.f32 %v385_v46, 0.0 }
  0xfe   : > { %v438_v50 = vpack.c.bf16 %v423_v48, %v422_v47 }
  0xff   : > { %v404_v51 = vpop.f32.mrf.mxu2 }
 0x100   : > { %v405_v52 = vadd.f32 %v404_v51, %v324_v42  ;;  %519 = vmatmul.bf16.vlgmr.msra.gmra.mxu1 %v438_v50 }
 0x101   : > { %v387_v53 = vpop.f32.mrf.mxu0 }
 0x102   : > { %v431_v55 = vmax.f32 %v405_v52, 0.0  ;;  %v388_v58 = vadd.f32 %v387_v53, %v324_v42 }
 0x104   : > { %v442_v56 = vpack.c.bf16 %v431_v55, %v430_v54  ;;  %v424_v61 = vmax.f32 %v388_v58, 0.0 }
 0x106   : > { %539 = vmatmul.bf16.vlgmr.msra.gmra.mxu3 %v442_v56 }
 0x107   : > { %v407_v57 = vpop.f32.mrf.mxu2 }
 0x108   : > { %v408_v63 = vadd.f32 %v407_v57, %v324_v42 }
 0x109   : > { %v389_v59 = vpop.f32.mrf.mxu0 }
 0x10a   : > { %v390_v60 = vadd.f32 %v389_v59, %v324_v42  ;;  %v432_v4 = vmax.f32 %v408_v63, 0.0 }
 0x10c   : > { %v425_v62 = vmax.f32 %v390_v60, 0.0 }
 0x10e   : > { %v439_v0 = vpack.c.bf16 %v425_v62, %v424_v61 }
 0x10f   : > { %v409_v1 = vpop.f32.mrf.mxu2 }
 0x110   : > { %v410_v2 = vadd.f32 %v409_v1, %v324_v42  ;;  %524 = vmatmul.bf16.gmra.mxu1 %v439_v0 }
 0x111   : > { %v392_v3 = vpop.f32.mrf.mxu0 }
 0x112   : > { %v433_v5 = vmax.f32 %v410_v2, 0.0  ;;  %v393_v8 = vadd.f32 %v392_v3, %v324_v42 }
 0x114   : > { %v443_v6 = vpack.c.bf16 %v433_v5, %v432_v4  ;;  %v426_v11 = vmax.f32 %v393_v8, 0.0  ;;  %v1586_v4 = vmov 128.0  }
 0x115   : > { %1328 = vrcp.f32 %v1586_v4 }
 0x116   : > { %544 = vmatmul.bf16.gmra.mxu3 %v443_v6 }
 0x117   : > { %v412_v7 = vpop.f32.mrf.mxu2 }
 0x118   : > { %v413_v13 = vadd.f32 %v412_v7, %v324_v42 }
 0x119   : > { %v394_v9 = vpop.f32.mrf.mxu0 }
 0x11a   : > { %v395_v10 = vadd.f32 %v394_v9, %v324_v42  ;;  %v434_v18 = vmax.f32 %v413_v13, 0.0 }
 0x11b   : > { %v1329_v5 = vpop.eup %1328 }
 0x11c   : > { %v427_v12 = vmax.f32 %v395_v10, 0.0  ;;  %v593_v6 = vmul.f32 128.0, %v1329_v5  ;;  %vm597_vm0 = vweird.f32 %v1329_v5 }
 0x11e   : > { %v440_v14 = vpack.c.bf16 %v427_v12, %v426_v11  ;;  %v594_v7 = vsub.f32 1.0, %v593_v6 }
 0x11f   : > { %v414_v15 = vpop.f32.mrf.mxu2 }
 0x120   : > { %v415_v16 = vadd.f32 %v414_v15, %v324_v42  ;;  %529 = vmatmul.bf16.gmra.mxu1 %v440_v14  ;;  %v595_v8 = vmul.f32 %v1329_v5, %v594_v7 }
 0x121   : > { %v397_v17 = vpop.f32.mrf.mxu0 }
 0x122   : > { %v435_v19 = vmax.f32 %v415_v16, 0.0  ;;  %v398_v22 = vadd.f32 %v397_v17, %v324_v42  ;;  %v596_v9 = vadd.f32 %v1329_v5, %v595_v8 }
 0x124   : > { %v444_v20 = vpack.c.bf16 %v435_v19, %v434_v18  ;;  %v428_v25 = vmax.f32 %v398_v22, 0.0  ;;  %v1830_v10 = vsel %vm597_vm0, %v1329_v5, %v596_v9 }
 0x126   : > { %549 = vmatmul.bf16.gmra.mxu3 %v444_v20 }
 0x127   : > { %v417_v21 = vpop.f32.mrf.mxu2 }
 0x128   : > { %v418_v27 = vadd.f32 %v417_v21, %v324_v42 }
 0x129   : > { %v399_v23 = vpop.f32.mrf.mxu0 }
 0x12a   : > { %v400_v24 = vadd.f32 %v399_v23, %v324_v42  ;;  %v436_v31 = vmax.f32 %v418_v27, 0.0 }
 0x12c   : > { %v429_v26 = vmax.f32 %v400_v24, 0.0 }
 0x12e   : > { %v441_v28 = vpack.c.bf16 %v429_v26, %v428_v25 }
 0x12f   : > { %v419_v29 = vpop.f32.mrf.mxu2 }
 0x130   : > { %v420_v30 = vadd.f32 %v419_v29, %v324_v42  ;;  %534 = vmatmul.bf16.gmra.mxu1 %v441_v28 }
 0x132   : > { %v437_v32 = vmax.f32 %v420_v30, 0.0 }
 0x134   : > { %v445_v33 = vpack.c.bf16 %v437_v32, %v436_v31 }
 0x136   : > { %554 = vmatmul.bf16.gmra.mxu3 %v445_v33 }
 0x17d   : > { %v520_v35 = vpop.f32.mrf.mxu1 }
 0x17e   : > { %v521_v36 = vadd.f32 %v520_v35, %v462_v34 }
 0x180   : > { %560 = vadd.xlane.f32.xlu0 %v521_v36 }
 0x185   : > { %v522_v37 = vpop.f32.mrf.mxu1 }
 0x186   : > { %v523_v38 = vadd.f32 %v522_v37, %v462_v34 }
 0x188   : > { %562 = vadd.xlane.f32.xlu0 %v523_v38 }
 0x189   : > { %v540_v39 = vpop.f32.mrf.mxu3 }
 0x18a   : > { %v541_v41 = vadd.f32 %v540_v39, %v462_v34 }
 0x18c   : > { %576 = vadd.xlane.f32.xlu2 %v541_v41 }
 0x18d   : > { %v525_v43 = vpop.f32.mrf.mxu1 }
 0x18e   : > { %v1791_v44 = vadd.f32 %v525_v43, %v462_v34 }
 0x190   : > { %564 = vadd.xlane.f32.xlu1 %v1791_v44 }
 0x191   : > { %v542_v42 = vpop.f32.mrf.mxu3 }
 0x192   : > { %v1794_v45 = vadd.f32 %v542_v42, %v462_v34 }
 0x194   : > { %578 = vadd.xlane.f32.xlu0 %v1794_v45 }
 0x195   : > { %v527_v46 = vpop.f32.mrf.mxu1 }
 0x196   : > { %v1797_v47 = vadd.f32 %v527_v46, %v462_v34 }
 0x198   : > { %566 = vadd.xlane.f32.xlu1 %v1797_v47 }
 0x199   : > { %v545_v48 = vpop.f32.mrf.mxu3 }
 0x19a   : > { %v1800_v50 = vadd.f32 %v545_v48, %v462_v34 }
 0x19d   : > { %v530_v49 = vpop.f32.mrf.mxu1 }
 0x19e   : > { %v1802_v51 = vadd.f32 %v530_v49, %v462_v34 }
 0x1a0   : > { %568 = vadd.xlane.f32.xlu2 %v1802_v51  ;;  %580 = vadd.xlane.f32.xlu1 %v1800_v50 }
 0x1a1   : > { %v547_v52 = vpop.f32.mrf.mxu3 }
 0x1a2   : > { %v1806_v54 = vadd.f32 %v547_v52, %v462_v34 }
 0x1a5   : > { %v532_v53 = vpop.f32.mrf.mxu1 }
 0x1a6   : > { %v1812_v58 = vadd.f32 %v532_v53, %v462_v34 }
 0x1a8   : > { %582 = vadd.xlane.f32.xlu2 %v1806_v54 }
 0x1a9   : > { %v550_v55 = vpop.f32.mrf.mxu3 }
 0x1aa   : > { %v1809_v56 = vadd.f32 %v550_v55, %v462_v34 }
 0x1ac   : > { %584 = vadd.xlane.f32.xlu0 %v1809_v56 }
 0x1ad   : > { %v535_v57 = vpop.f32.mrf.mxu1 }
 0x1ae   : > { %v1815_v60 = vadd.f32 %v535_v57, %v462_v34 }
 0x1b0   : > { %570 = vadd.xlane.f32.xlu2 %v1812_v58 }
 0x1b1   : > { %v552_v59 = vpop.f32.mrf.mxu3 }
 0x1b2   : > { %v1817_v61 = vadd.f32 %v552_v59, %v462_v34 }
 0x1b4   : > { %586 = vadd.xlane.f32.xlu1 %v1817_v61  ;;  %572 = vadd.xlane.f32.xlu0 %v1815_v60 }
 0x1b5   : > { %v537_v62 = vpop.f32.mrf.mxu1 }
 0x1b6   : > { %v1821_v0 = vadd.f32 %v537_v62, %v462_v34 }
 0x1b9   : > { %v555_v63 = vpop.f32.mrf.mxu3 }
 0x1ba   : > { %v1823_v1 = vadd.f32 %v555_v63, %v462_v34 }
 0x1bc   : > { %588 = vadd.xlane.f32.xlu2 %v1823_v1  ;;  %574 = vadd.xlane.f32.xlu1 %v1821_v0 }
 0x1c1   : > { %v557_v2 = vpop.f32.mrf.mxu3 }
 0x1c2   : > { %v1827_v3 = vadd.f32 %v557_v2, %v462_v34 }
 0x1c4   : > { %590 = vadd.xlane.f32.xlu0 %v1827_v3 }
 0x1f3   : > { %v561_v11 = vpop.xlane.xlu0 %560 }
 0x1f4   : > { %v599_v12 = vmul.f32 %v1830_v10, %v561_v11 }
 0x1f6   : > { %v1833_v13 = vsub.f32 %v521_v36, %v599_v12 }
 0x1f8   : > { %v631_v14 = vmul.f32 %v1833_v13, %v1833_v13 }
 0x1fa   : > { %647 = vadd.xlane.f32.xlu1 %v631_v14 }
 0x1fb   : > { %v563_v15 = vpop.xlane.xlu0 %562 }
 0x1fc   : > { %v600_v16 = vmul.f32 %v1830_v10, %v563_v15 }
 0x1fe   : > { %v1838_v17 = vsub.f32 %v523_v38, %v600_v16 }
 0x1ff   : > { %v577_v18 = vpop.xlane.xlu2 %576 }
 0x200   : > { %v607_v19 = vmul.f32 %v1830_v10, %v577_v18  ;;  %v632_v20 = vmul.f32 %v1838_v17, %v1838_v17 }
 0x202   : > { %v1843_v21 = vsub.f32 %v541_v41, %v607_v19  ;;  %649 = vadd.xlane.f32.xlu2 %v632_v20 }
 0x203   : > { %v565_v22 = vpop.xlane.xlu1 %564 }
 0x204   : > { %v601_v23 = vmul.f32 %v1830_v10, %v565_v22  ;;  %v639_v24 = vmul.f32 %v1843_v21, %v1843_v21 }
 0x206   : > { %663 = vadd.xlane.f32.xlu0 %v639_v24  ;;  %v1849_v26 = vsub.f32 %v1791_v44, %v601_v23 }
 0x207   : > { %v579_v25 = vpop.xlane.xlu0 %578 }
 0x208   : > { %v608_v27 = vmul.f32 %v1830_v10, %v579_v25  ;;  %v633_v31 = vmul.f32 %v1849_v26, %v1849_v26 }
 0x20a   : > { %v1853_v28 = vsub.f32 %v1794_v45, %v608_v27 }
 0x20b   : > { %v567_v29 = vpop.xlane.xlu1 %566 }
 0x20c   : > { %v602_v30 = vmul.f32 %v1830_v10, %v567_v29  ;;  %v640_v32 = vmul.f32 %v1853_v28, %v1853_v28 }
 0x20e   : > { %651 = vadd.xlane.f32.xlu0 %v633_v31  ;;  %665 = vadd.xlane.f32.xlu1 %v640_v32  ;;  %v1861_v33 = vsub.f32 %v1797_v47, %v602_v30 }
 0x210   : > { %v634_v37 = vmul.f32 %v1861_v33, %v1861_v33 }
 0x213   : > { %v569_v34 = vpop.xlane.xlu2 %568  ;;  %v581_v35 = vpop.xlane.xlu1 %580 }
 0x214   : > { %v609_v36 = vmul.f32 %v1830_v10, %v581_v35  ;;  %v603_v39 = vmul.f32 %v1830_v10, %v569_v34 }
 0x216   : > { %v1867_v38 = vsub.f32 %v1800_v50, %v609_v36  ;;  %653 = vadd.xlane.f32.xlu1 %v634_v37  ;;  %v1873_v44 = vsub.f32 %v1802_v51, %v603_v39 }
 0x218   : > { %v641_v41 = vmul.f32 %v1867_v38, %v1867_v38  ;;  %v635_v49 = vmul.f32 %v1873_v44, %v1873_v44 }
 0x21a   : > { %667 = vadd.xlane.f32.xlu2 %v641_v41 }
 0x21b   : > { %v583_v43 = vpop.xlane.xlu2 %582 }
 0x21c   : > { %v610_v42 = vmul.f32 %v1830_v10, %v583_v43 }
 0x21e   : > { %v1877_v45 = vsub.f32 %v1806_v54, %v610_v42 }
 0x21f   : > { %v585_v46 = vpop.xlane.xlu0 %584 }
 0x220   : > { %v611_v47 = vmul.f32 %v1830_v10, %v585_v46  ;;  %v642_v48 = vmul.f32 %v1877_v45, %v1877_v45 }
 0x222   : > { %v1885_v50 = vsub.f32 %v1809_v56, %v611_v47  ;;  %669 = vadd.xlane.f32.xlu0 %v642_v48  ;;  %655 = vadd.xlane.f32.xlu2 %v635_v49 }
 0x223   : > { %v571_v51 = vpop.xlane.xlu2 %570 }
 0x224   : > { %v604_v52 = vmul.f32 %v1830_v10, %v571_v51  ;;  %v643_v53 = vmul.f32 %v1885_v50, %v1885_v50 }
 0x226   : > { %v1891_v54 = vsub.f32 %v1812_v58, %v604_v52  ;;  %671 = vadd.xlane.f32.xlu1 %v643_v53 }
 0x227   : > { %v587_v55 = vpop.xlane.xlu1 %586  ;;  %v573_v57 = vpop.xlane.xlu0 %572 }
 0x228   : > { %v605_v59 = vmul.f32 %v1830_v10, %v573_v57  ;;  %v636_v56 = vmul.f32 %v1891_v54, %v1891_v54 }
 0x22a   : > { %v1897_v62 = vsub.f32 %v1815_v60, %v605_v59  ;;  %657 = vadd.xlane.f32.xlu0 %v636_v56  ;;  %v612_v60 = vmul.f32 %v1830_v10, %v587_v55  ;;  %v1934_v55 = vperm.slane %v1787_v40, 2 }
 0x22c   : > { %v637_v63 = vmul.f32 %v1897_v62, %v1897_v62  ;;  %v1915_v12 = vsub.f32 %v1817_v61, %v612_v60 }
 0x22e   : > { %659 = vadd.xlane.f32.xlu1 %v637_v63 }
 0x22f   : > { %v589_v2 = vpop.xlane.xlu2 %588  ;;  %v575_v4 = vpop.xlane.xlu1 %574 }
 0x230   : > { %v613_v58 = vmul.f32 %v1830_v10, %v589_v2  ;;  %v606_v5 = vmul.f32 %v1830_v10, %v575_v4  ;;  %v1939_v4 = vperm.slane %v1787_v40, 3 }
 0x232   : > { %v1904_v6 = vsub.f32 %v1823_v1, %v613_v58  ;;  %v1907_v7 = vsub.f32 %v1821_v0, %v606_v5  ;;  %v644_v0 = vmul.f32 %v1915_v12, %v1915_v12 }
 0x234   : > { %v645_v8 = vmul.f32 %v1904_v6, %v1904_v6  ;;  %v638_v9 = vmul.f32 %v1907_v7, %v1907_v7 }
 0x236   : > { %675 = vadd.xlane.f32.xlu0 %v645_v8  ;;  %661 = vadd.xlane.f32.xlu2 %v638_v9 }
 0x237   : > { %v591_v11 = vpop.xlane.xlu0 %590 }
 0x238   : > { %v614_v1 = vmul.f32 %v1830_v10, %v591_v11 }
 0x23a   : > { %v1919_v14 = vsub.f32 %v1827_v3, %v614_v1 }
 0x23c   : > { %v646_v15 = vmul.f32 %v1919_v14, %v1919_v14 }
 0x23e   : > { %673 = vadd.xlane.f32.xlu2 %v644_v0  ;;  %677 = vadd.xlane.f32.xlu1 %v646_v15 }
 0x26d   : > { %v648_v16 = vpop.xlane.xlu1 %647 }
 0x26e   : > { %v679_v18 = vmul.f32 %v648_v16, %v1830_v10 }
 0x270   : > { %v695_v19 = vadd.f32 1e-05, %v679_v18 }
 0x272   : > { %1330 = vrsqrt.f32 %v695_v19  ;;  %vm717_vm2 = vweird.f32 %v695_v19 }
 0x275   : > { %v650_v61 = vpop.xlane.xlu2 %649 }
 0x276   : > { %v680_v20 = vmul.f32 %v650_v61, %v1830_v10 }
 0x278   : > { %v1331_v22 = vpop.eup %1330  ;;  %v696_v23 = vadd.f32 1e-05, %v680_v20 }
 0x279   : > { %v712_v3 = vmul.f32 %v1331_v22, %v695_v19  ;;  %v664_v24 = vpop.xlane.xlu0 %663  ;;  %vm718_vm1 = vweird.f32 %v1331_v22 }
 0x27a   : > { %1332 = vrsqrt.f32 %v696_v23  ;;  %v687_v25 = vmul.f32 %v664_v24, %v1830_v10  ;;  %vm719_vm3 = vmor %vm717_vm2, %vm718_vm1  ;;  %vm727_vm5 = vweird.f32 %v696_v23 }
 0x27b   : > { %v713_v27 = vmul.f32 %v1331_v22, %v712_v3 }
 0x27c   : > { %v703_v29 = vadd.f32 1e-05, %v687_v25 }
 0x27d   : > { %v714_v30 = vmul.f32 0.5, %v713_v27 }
 0x27e   : > { %1334 = vrsqrt.f32 %v703_v29  ;;  %vm797_vm8 = vweird.f32 %v703_v29 }
 0x27f   : > { %v715_v31 = vsub.f32 1.5, %v714_v30 }
 0x280   : > { %v1333_v32 = vpop.eup %1332 }
 0x281   : > { %v716_v34 = vmul.f32 %v1331_v22, %v715_v31  ;;  %v722_v35 = vmul.f32 %v1333_v32, %v696_v23  ;;  %v666_v36 = vpop.xlane.xlu1 %665  ;;  %v652_v37 = vpop.xlane.xlu0 %651  ;;  %vm728_vm4 = vweird.f32 %v1333_v32 }
 0x282   : > { %v688_v39 = vmul.f32 %v666_v36, %v1830_v10  ;;  %v681_v41 = vmul.f32 %v652_v37, %v1830_v10  ;;  %vm729_vm6 = vmor %vm727_vm5, %vm728_vm4 }
 0x283   : > { %v723_v43 = vmul.f32 %v1333_v32, %v722_v35  ;;  %v720_v48 = vsel %vm719_vm3, %v1331_v22, %v716_v34 }
 0x284   : > { %v1335_v42 = vpop.eup %1334  ;;  %v704_v46 = vadd.f32 1e-05, %v688_v39  ;;  %v1930_v47 = vadd.f32 1e-05, %v681_v41  ;;  %v871_v57 = vmul.f32 %v720_v48, %v1833_v13 }
 0x285   : > { %v724_v49 = vmul.f32 0.5, %v723_v43  ;;  %v792_v51 = vmul.f32 %v1335_v42, %v703_v29  ;;  %vm798_vm7 = vweird.f32 %v1335_v42 }
 0x286   : > { %1336 = vrsqrt.f32 %v704_v46  ;;  %v888_v8 = vmul.f32 %v1934_v55, %v871_v57  ;;  %vm799_vm9 = vmor %vm797_vm8, %vm798_vm7  ;;  %vm807_vm11 = vweird.f32 %v704_v46  ;;  %vm737_vm14 = vweird.f32 %v1930_v47 }
 0x287   : > { %v725_v52 = vsub.f32 1.5, %v724_v49  ;;  %v793_v53 = vmul.f32 %v1335_v42, %v792_v51  ;;  %1338 = vrsqrt.f32 %v1930_v47 }
 0x289   : > { %v726_v59 = vmul.f32 %v1333_v32, %v725_v52  ;;  %v794_v56 = vmul.f32 0.5, %v793_v53  ;;  %v654_v63 = vpop.xlane.xlu1 %653 }
 0x28a   : > { %v682_v2 = vmul.f32 %v654_v63, %v1830_v10 }
 0x28b   : > { %v730_v58 = vsel %vm729_vm6, %v1333_v32, %v726_v59  ;;  %v795_v5 = vsub.f32 1.5, %v794_v56 }
 0x28c   : > { %v1337_v60 = vpop.eup %1336  ;;  %v872_v9 = vmul.f32 %v730_v58, %v1838_v17  ;;  %v1943_v13 = vadd.f32 1e-05, %v682_v2  ;;  %v905_v17 = vadd.f32 %v1939_v4, %v888_v8 }
 0x28d   : > { %v1339_v11 = vpop.eup %1338  ;;  %v796_v1 = vmul.f32 %v1335_v42, %v795_v5  ;;  %v802_v0 = vmul.f32 %v1337_v60, %v704_v46  ;;  %v668_v15 = vpop.xlane.xlu2 %667  ;;  %vm808_vm10 = vweird.f32 %v1337_v60 }
 0x28e   : > { %v889_v16 = vmul.f32 %v1934_v55, %v872_v9  ;;  %v732_v40 = vmul.f32 %v1339_v11, %v1930_v47  ;;  %1340 = vrsqrt.f32 %v1943_v13  ;;  %v689_v19 = vmul.f32 %v668_v15, %v1830_v10  ;;  %vm809_vm13 = vmor %vm807_vm11, %vm808_vm10 }
 0x28f   : > { %v803_v18 = vmul.f32 %v1337_v60, %v802_v0  ;;  %v800_v20 = vsel %vm799_vm9, %v1335_v42, %v796_v1  ;;  %vm738_vm12 = vweird.f32 %v1339_v11  ;;  %vm747_vm1 = vweird.f32 %v1943_v13 }
 0x290   : > { %v906_v61 = vadd.f32 %v1939_v4, %v889_v16  ;;  %v733_v22 = vmul.f32 %v1339_v11, %v732_v40  ;;  %v1952_v3 = vadd.f32 1e-05, %v689_v19  ;;  %v879_v27 = vmul.f32 %v800_v20, %v1843_v21  ;;  %vm739_vm15 = vmor %vm737_vm14, %vm738_vm12 }
 0x291   : > { %v804_v23 = vmul.f32 0.5, %v803_v18 }
 0x292   : > { %v1191_v24 = vpack.c.bf16 %v906_v61, %v905_v17  ;;  %v734_v25 = vmul.f32 0.5, %v733_v22  ;;  %1342 = vrsqrt.f32 %v1952_v3  ;;  %v896_v41 = vmul.f32 %v1934_v55, %v879_v27 }
 0x293   : > { %v805_v29 = vsub.f32 1.5, %v804_v23  ;;  %vm817_vm4 = vweird.f32 %v1952_v3 }
 0x294   : > { %v1341_v30 = vpop.eup %1340  ;;  %1192 = vst [vmem:[%s1956_s29] sm:$0xff] %v1191_v24   ;;  %v735_v31 = vsub.f32 1.5, %v734_v25  ;;  %v913_v47 = vadd.f32 %v1939_v4, %v896_v41 }
 0x295   : > { %v806_v32 = vmul.f32 %v1337_v60, %v805_v29  ;;  %v742_v34 = vmul.f32 %v1341_v30, %v1943_v13  ;;  %v656_v35 = vpop.xlane.xlu2 %655  ;;  %v670_v36 = vpop.xlane.xlu0 %669  ;;  %vm748_vm0 = vweird.f32 %v1341_v30 }
 0x296   : > { %v736_v37 = vmul.f32 %v1339_v11, %v735_v31  ;;  %v683_v21 = vmul.f32 %v656_v35, %v1830_v10  ;;  %v690_v39 = vmul.f32 %v670_v36, %v1830_v10  ;;  %vm749_vm2 = vmor %vm747_vm1, %vm748_vm0 }
 0x297   : > { %v810_v43 = vsel %vm809_vm13, %v1337_v60, %v806_v32  ;;  %v743_v42 = vmul.f32 %v1341_v30, %v742_v34 }
 0x298   : > { %v880_v48 = vmul.f32 %v810_v43, %v1853_v28  ;;  %v1965_v46 = vadd.f32 1e-05, %v683_v21  ;;  %v1967_v49 = vadd.f32 1e-05, %v690_v39  ;;  %v1343_v51 = vpop.eup %1342  ;;  %v740_v52 = vsel %vm739_vm15, %v1339_v11, %v736_v37 }
 0x299   : > { %v744_v53 = vmul.f32 0.5, %v743_v42  ;;  %v672_v57 = vpop.xlane.xlu1 %671  ;;  %v812_v56 = vmul.f32 %v1343_v51, %v1952_v3  ;;  %v873_v2 = vmul.f32 %v740_v52, %v1849_v26  ;;  %vm818_vm3 = vweird.f32 %v1343_v51 }
 0x29a   : > { %v897_v59 = vmul.f32 %v1934_v55, %v880_v48  ;;  %1344 = vrsqrt.f32 %v1965_v46  ;;  %v691_v5 = vmul.f32 %v672_v57, %v1830_v10  ;;  %vm819_vm5 = vmor %vm817_vm4, %vm818_vm3  ;;  %vm827_vm8 = vweird.f32 %v1967_v49 }
 0x29b   : > { %v745_v63 = vsub.f32 1.5, %v744_v53  ;;  %1346 = vrsqrt.f32 %v1967_v49  ;;  %v813_v58 = vmul.f32 %v1343_v51, %v812_v56  ;;  %v890_v40 = vmul.f32 %v1934_v55, %v873_v2 }
 0x29c   : > { %v914_v28 = vadd.f32 %v1939_v4, %v897_v59  ;;  %v1978_v1 = vadd.f32 1e-05, %v691_v5  ;;  %vm757_vm9 = vweird.f32 %v1965_v46 }
 0x29d   : > { %v746_v60 = vmul.f32 %v1341_v30, %v745_v63  ;;  %v658_v8 = vpop.xlane.xlu0 %657  ;;  %v814_v11 = vmul.f32 0.5, %v813_v58  ;;  %v907_v25 = vadd.f32 %v1939_v4, %v890_v40 }
 0x29e   : > { %v1211_v9 = vpack.c.bf16 %v914_v28, %v913_v47  ;;  %v684_v0 = vmul.f32 %v658_v8, %v1830_v10  ;;  %1348 = vrsqrt.f32 %v1978_v1 }
 0x29f   : > { %v750_v15 = vsel %vm749_vm2, %v1341_v30, %v746_v60  ;;  %v815_v18 = vsub.f32 1.5, %v814_v11 }
 0x2a0   : > { %v1345_v16 = vpop.eup %1344  ;;  %1231 = vst [vmem:[%s1956_s29 + $0x20] sm:$0xff] %v1211_v9   ;;  %v874_v26 = vmul.f32 %v750_v15, %v1861_v33  ;;  %v1985_v17 = vadd.f32 1e-05, %v684_v0 }
 0x2a1   : > { %v1347_v19 = vpop.eup %1346  ;;  %v752_v13 = vmul.f32 %v1345_v16, %v1965_v46  ;;  %v660_v61 = vpop.xlane.xlu1 %659  ;;  %v816_v22 = vmul.f32 %v1343_v51, %v815_v18  ;;  %vm758_vm7 = vweird.f32 %v1345_v16 }
 0x2a2   : > { %v891_v20 = vmul.f32 %v1934_v55, %v874_v26  ;;  %v822_v23 = vmul.f32 %v1347_v19, %v1967_v49  ;;  %1350 = vrsqrt.f32 %v1985_v17  ;;  %v685_v33 = vmul.f32 %v660_v61, %v1830_v10  ;;  %vm759_vm11 = vmor %vm757_vm9, %vm758_vm7 }
 0x2a3   : > { %v753_v24 = vmul.f32 %v1345_v16, %v752_v13  ;;  %v820_v34 = vsel %vm819_vm5, %v1343_v51, %v816_v22  ;;  %vm828_vm6 = vweird.f32 %v1347_v19  ;;  %vm767_vm13 = vweird.f32 %v1985_v17 }
 0x2a4   : > { %v908_v27 = vadd.f32 %v1939_v4, %v891_v20  ;;  %v823_v29 = vmul.f32 %v1347_v19, %v822_v23  ;;  %v1996_v31 = vadd.f32 1e-05, %v685_v33  ;;  %v1998_v37 = vpop.eup %1348  ;;  %v881_v3 = vmul.f32 %v820_v34, %v1867_v38  ;;  %vm829_vm10 = vmor %vm827_vm8, %vm828_vm6 }
 0x2a5   : > { %v754_v30 = vmul.f32 0.5, %v753_v24  ;;  %v832_v53 = vmul.f32 %v1998_v37, %v1978_v1  ;;  %vm838_vm3 = vweird.f32 %v1998_v37  ;;  %vm837_vm5 = vweird.f32 %v1978_v1 }
 0x2a6   : > { %v1196_v32 = vpack.c.bf16 %v908_v27, %v907_v25  ;;  %v824_v35 = vmul.f32 0.5, %v823_v29  ;;  %1352 = vrsqrt.f32 %v1996_v31  ;;  %v898_v47 = vmul.f32 %v1934_v55, %v881_v3  ;;  %vm839_vm8 = vmor %vm837_vm5, %vm838_vm3 }
 0x2a7   : > { %v755_v36 = vsub.f32 1.5, %v754_v30  ;;  %v833_v5 = vmul.f32 %v1998_v37, %v832_v53  ;;  %vm777_vm0 = vweird.f32 %v1996_v31 }
 0x2a8   : > { %1228 = vst [vmem:[%s1956_s29 + $0x8] sm:$0xff] %v1196_v32   ;;  %v825_v21 = vsub.f32 1.5, %v824_v35  ;;  %v1351_v39 = vpop.eup %1350 }
 0x2a9   : > { %v756_v41 = vmul.f32 %v1345_v16, %v755_v36  ;;  %v662_v43 = vpop.xlane.xlu2 %661  ;;  %v676_v42 = vpop.xlane.xlu0 %675  ;;  %v762_v51 = vmul.f32 %v1351_v39, %v1985_v17  ;;  %vm768_vm12 = vweird.f32 %v1351_v39 }
 0x2aa   : > { %v826_v48 = vmul.f32 %v1347_v19, %v825_v21  ;;  %v686_v52 = vmul.f32 %v662_v43, %v1830_v10  ;;  %v693_v57 = vmul.f32 %v676_v42, %v1830_v10  ;;  %vm769_vm14 = vmor %vm767_vm13, %vm768_vm12 }
 0x2ab   : > { %v763_v59 = vmul.f32 %v1351_v39, %v762_v51  ;;  %v760_v49 = vsel %vm759_vm11, %v1345_v16, %v756_v41 }
 0x2ac   : > { %v830_v38 = vsel %vm829_vm10, %v1347_v19, %v826_v48  ;;  %v2010_v56 = vadd.f32 1e-05, %v686_v52  ;;  %v2014_v28 = vadd.f32 1e-05, %v693_v57  ;;  %v1353_v2 = vpop.eup %1352  ;;  %v875_v8 = vmul.f32 %v760_v49, %v1873_v44 }
 0x2ad   : > { %v882_v63 = vmul.f32 %v830_v38, %v1877_v45  ;;  %v764_v46 = vmul.f32 0.5, %v763_v59  ;;  %v772_v60 = vmul.f32 %v1353_v2, %v1996_v31  ;;  %v915_v45 = vadd.f32 %v1939_v4, %v898_v47 }
 0x2ae   : > { %1354 = vrsqrt.f32 %v2010_v56  ;;  %v834_v19 = vmul.f32 0.5, %v833_v5  ;;  %v892_v20 = vmul.f32 %v1934_v55, %v875_v8  ;;  %vm778_vm15 = vweird.f32 %v1353_v2 }
 0x2af   : > { %v899_v58 = vmul.f32 %v1934_v55, %v882_v63  ;;  %v765_v9 = vsub.f32 1.5, %v764_v46  ;;  %1356 = vrsqrt.f32 %v2014_v28  ;;  %v773_v0 = vmul.f32 %v1353_v2, %v772_v60  ;;  %vm779_vm1 = vmor %vm777_vm0, %vm778_vm15 }
 0x2b0   : > { %v909_v34 = vadd.f32 %v1939_v4, %v892_v20  ;;  %v835_v35 = vsub.f32 1.5, %v834_v19  ;;  %vm787_vm4 = vweird.f32 %v2010_v56  ;;  %vm857_vm9 = vweird.f32 %v2014_v28 }
 0x2b1   : > { %v916_v11 = vadd.f32 %v1939_v4, %v899_v58  ;;  %v674_v15 = vpop.xlane.xlu2 %673  ;;  %v678_v16 = vpop.xlane.xlu1 %677  ;;  %v766_v40 = vmul.f32 %v1351_v39, %v765_v9  ;;  %v774_v13 = vmul.f32 0.5, %v773_v0 }
 0x2b2   : > { %v692_v26 = vmul.f32 %v674_v15, %v1830_v10  ;;  %v694_v18 = vmul.f32 %v678_v16, %v1830_v10  ;;  %v836_v48 = vmul.f32 %v1998_v37, %v835_v35 }
 0x2b3   : > { %v1216_v44 = vpack.c.bf16 %v916_v11, %v915_v45  ;;  %v770_v22 = vsel %vm769_vm14, %v1351_v39, %v766_v40  ;;  %v775_v17 = vsub.f32 1.5, %v774_v13 }
 0x2b4   : > { %v1355_v61 = vpop.eup %1354  ;;  %v2028_v23 = vadd.f32 1e-05, %v692_v26  ;;  %v2030_v24 = vadd.f32 1e-05, %v694_v18  ;;  %v876_v33 = vmul.f32 %v770_v22, %v1891_v54  ;;  %v840_v63 = vsel %vm839_vm8, %v1998_v37, %v836_v48 }
 0x2b5   : > { %1232 = vst [vmem:[%s1956_s29 + $0x28] sm:$0xff] %v1216_v44   ;;  %v782_v25 = vmul.f32 %v1355_v61, %v2010_v56  ;;  %v1357_v10 = vpop.eup %1356  ;;  %v776_v29 = vmul.f32 %v1353_v2, %v775_v17  ;;  %vm788_vm2 = vweird.f32 %v1355_v61  ;;  %v883_v8 = vmul.f32 %v840_v63, %v1885_v50 }
 0x2b6   : > { %1358 = vrsqrt.f32 %v2028_v23  ;;  %v893_v27 = vmul.f32 %v1934_v55, %v876_v33  ;;  %v852_v32 = vmul.f32 %v1357_v10, %v2014_v28  ;;  %vm789_vm6 = vmor %vm787_vm4, %vm788_vm2  ;;  %vm858_vm7 = vweird.f32 %v1357_v10 }
 0x2b7   : > { %v783_v30 = vmul.f32 %v1355_v61, %v782_v25  ;;  %1360 = vrsqrt.f32 %v2030_v24  ;;  %v780_v36 = vsel %vm779_vm1, %v1353_v2, %v776_v29  ;;  %vm859_vm10 = vmor %vm857_vm9, %vm858_vm7  ;;  %vm847_vm12 = vweird.f32 %v2028_v23 }
 0x2b8   : > { %v910_v54 = vadd.f32 %v1939_v4, %v893_v27  ;;  %v853_v31 = vmul.f32 %v1357_v10, %v852_v32  ;;  %v877_v42 = vmul.f32 %v780_v36, %v1897_v62  ;;  %vm867_vm15 = vweird.f32 %v2030_v24 }
 0x2b9   : > { %v784_v21 = vmul.f32 0.5, %v783_v30  ;;  %v900_v50 = vmul.f32 %v1934_v55, %v883_v8 }
 0x2ba   : > { %v1201_v39 = vpack.c.bf16 %v910_v54, %v909_v34  ;;  %v854_v41 = vmul.f32 0.5, %v853_v31  ;;  %v894_v62 = vmul.f32 %v1934_v55, %v877_v42 }
 0x2bb   : > { %v785_v3 = vsub.f32 1.5, %v784_v21  ;;  %v917_v44 = vadd.f32 %v1939_v4, %v900_v50 }
 0x2bc   : > { %v1359_v43 = vpop.eup %1358  ;;  %1229 = vst [vmem:[%s1956_s29 + $0x10] sm:$0xff] %v1201_v39   ;;  %v855_v52 = vsub.f32 1.5, %v854_v41  ;;  %v911_v9 = vadd.f32 %v1939_v4, %v894_v62 }
 0x2bd   : > { %v786_v51 = vmul.f32 %v1355_v61, %v785_v3  ;;  %v842_v53 = vmul.f32 %v1359_v43, %v2028_v23  ;;  %v1361_v57 = vpop.eup %1360  ;;  %vm848_vm11 = vweird.f32 %v1359_v43 }
 0x2be   : > { %v856_v59 = vmul.f32 %v1357_v10, %v855_v52  ;;  %v862_v49 = vmul.f32 %v1361_v57, %v2030_v24  ;;  %vm868_vm13 = vweird.f32 %v1361_v57  ;;  %vm849_vm14 = vmor %vm847_vm12, %vm848_vm11 }
 0x2bf   : > { %v790_v38 = vsel %vm789_vm6, %v1355_v61, %v786_v51  ;;  %v843_v47 = vmul.f32 %v1359_v43, %v842_v53  ;;  %vm869_vm0 = vmor %vm867_vm15, %vm868_vm13 }
 0x2c0   : > { %v878_v56 = vmul.f32 %v790_v38, %v1907_v7  ;;  %v863_v1 = vmul.f32 %v1361_v57, %v862_v49  ;;  %v860_v58 = vsel %vm859_vm10, %v1357_v10, %v856_v59 }
 0x2c1   : > { %v844_v2 = vmul.f32 0.5, %v843_v47  ;;  %v885_v11 = vmul.f32 %v860_v58, %v1904_v6 }
 0x2c2   : > { %v895_v46 = vmul.f32 %v1934_v55, %v878_v56  ;;  %v864_v60 = vmul.f32 0.5, %v863_v1 }
 0x2c3   : > { %v845_v5 = vsub.f32 1.5, %v844_v2  ;;  %v902_v26 = vmul.f32 %v1934_v55, %v885_v11 }
 0x2c4   : > { %v912_v7 = vadd.f32 %v1939_v4, %v895_v46  ;;  %v865_v37 = vsub.f32 1.5, %v864_v60 }
 0x2c5   : > { %v846_v45 = vmul.f32 %v1359_v43, %v845_v5  ;;  %v919_v61 = vadd.f32 %v1939_v4, %v902_v26 }
 0x2c6   : > { %v1206_v28 = vpack.c.bf16 %v912_v7, %v911_v9  ;;  %v866_v15 = vmul.f32 %v1361_v57, %v865_v37 }
 0x2c7   : > { %v850_v0 = vsel %vm849_vm14, %v1359_v43, %v846_v45 }
 0x2c8   : > { %1230 = vst [vmem:[%s1956_s29 + $0x18] sm:$0xff] %v1206_v28   ;;  %v884_v16 = vmul.f32 %v850_v0, %v1915_v12  ;;  %v870_v40 = vsel %vm869_vm0, %v1361_v57, %v866_v15 }
 0x2c9   : > { %v886_v6 = vmul.f32 %v870_v40, %v1919_v14 }
 0x2ca   : > { %v901_v18 = vmul.f32 %v1934_v55, %v884_v16 }
 0x2cb   : > { %v903_v13 = vmul.f32 %v1934_v55, %v886_v6 }
 0x2cc   : > { %v918_v19 = vadd.f32 %v1939_v4, %v901_v18 }
 0x2cd   : > { %v920_v22 = vadd.f32 %v1939_v4, %v903_v13  ;;  %960 = sbr.rel (!%p1667_p11) target bundleno = 753 (0x2f1), region = 56 }
 0x2ce   : > { %v1221_v20 = vpack.c.bf16 %v918_v19, %v917_v44 }
 0x2cf   : > { %v1226_v12 = vpack.c.bf16 %v920_v22, %v919_v61 }
 0x2d0   : > { %1233 = vst [vmem:[%s1956_s29 + $0x30] sm:$0xff] %v1221_v20  }
 0x2d1   : > { %1234 = vst [vmem:[%s1956_s29 + $0x38] sm:$0xff] %v1226_v12  }
 0x2d2   : > { %s2166_s25 = smov (!%p963_p6, %s962_s25), 16 }
 0x2d3   : > { %s1163_s10 = sshll.u32 %s2166_s25, 2 }
 0x2d4   : > { %s966_s6 = ssub.s32 64, %s1163_s10 }
 0x2d5   : > { %s967_s7 = sshll.u32 %s966_s6, 4 }
 0x2d6   : > { %968 = vsyncadd %s954_s20, %s967_s7  ;;  %p2085_p9 = scmp.ne.s32.totalorder %s1163_s10, 0  ;;  %s1187_s9 = sshll.u32 %s1636_s19, 6 }
 0x2d7   : > { %s971_s13 = scalar_lea.hbm %s2142_s4, %s1187_s9  ;;  %s973_s22 = sshll.u32 %s1956_s29, 4  ;;  %s2094_s22 = int_to_ptr.vmem [resolvable:$true] %s973_s22 }
 0x2d8   : > { %s975_s12 = sshll.u32 %s971_s13, 4  ;;  %s1167_s30 = sshll.u32 %s2166_s25, 6  ;;  %s2096_s12 = int_to_ptr.hbm [resolvable:$true] %s975_s12 }
 0x2d9   : > { %s1491_s5 = sshra.s32 %s2094_s22, 4  ;;  %s1493_s26 = sshrl.u32 %s1167_s30, 4  ;;  %s1492_s5 = int_to_ptr.vmem [resolvable:$true] %s1491_s5 }
 0x2da   : > { %s1498_s14 = scalar_lea.vmem %s1492_s5, %s1493_s26  ;;  %s1587_s19 = smov [#allocation10]  }
 0x2db   : > { %p1499_p11 = scmp.ne.s32.totalorder %s1492_s5, %s1498_s14  ;;  %s1502_s10 = scalar_lea.vmem %s1587_s19, 128 }
 0x2dc   : > { %p1504_p0 = scmp.lt.s32.totalorder %s1502_s10, %s1498_s14 }
 0x2dd   : > { %p1500_p10 = pnand %p1499_p11, %p2085_p9 }
 0x2df   : > { %p1501_p1 = pneg %p1500_p10 }
 0x2e1   : > { %p1506_p2 = pnand %p1504_p0, %p1501_p1 }
 0x2e3   : > { %1509 = shalt.err (!%p1506_p2)
}
 0x2e4   : > { %s1510_s29 = sshra.s32 %s2096_s12, 4  ;;  %s1521_s23 = scalar_lea.hbm %s2142_s4, 200  ;;  %s1511_s29 = int_to_ptr.hbm [resolvable:$true] %s1510_s29 }
 0x2e5   : > { %s1517_s6 = scalar_lea.hbm %s1511_s29, %s1493_s26  ;;  %p1522_p4 = scmp.lt.s32.totalorder %s1511_s29, %s2142_s4 }
 0x2e6   : > { %p1518_p3 = scmp.ne.s32.totalorder %s1511_s29, %s1517_s6  ;;  %p1523_p12 = scmp.lt.s32.totalorder %s1521_s23, %s1517_s6 }
 0x2e8   : > { %p1519_p7 = pnand %p1518_p3, %p2085_p9  ;;  %p1524_p13 = por %p1523_p12, %p1522_p4 }
 0x2ea   : > { %p1520_p8 = pneg %p1519_p7 }
 0x2ec   : > { %p1525_p5 = pnand %p1524_p13, %p1520_p8 }
 0x2ee   : > { %1528 = shalt.err (!%p1525_p5)
}
 0x2ef   : > { %s1588_s5 = smov 64   ;;  %s1589_s26 = smov 4  }
 0x2f0   : > { %981 = dma.vmem_to_hbm [thread:$0]  (%p2085_p9), %s2094_s22, %s1167_s30, %s2096_s12, %s954_s20, %s1588_s5, %s1588_s5, %s1589_s26  }
 0x2f1 PF: > { %p1285_p6 = scmp.ge.s32.totalorder %s1576_s18, 2  ;;  %s990_s14 = sand.u32 1, %s1564_s15  }
 0x2f2   : > { %p2158_p11 = scmp.ne.s32.totalorder %s2148_s28, 0  ;;  %s991_s19 = scalar_lea.sflag [#allocation4], %s990_s14 }
 0x2f4   : > { %p1276_p10 = pnand %p1285_p6, %p2158_p11 }
 0x2f6   : > { %p1277_p1 = pneg %p1276_p10 }
 0x2f8   : > { %1559 = dma.done.wait (%p1277_p1), %s991_s19, 1024  }
 0x2f9   : > { %1561 = vsyncadd (%p1277_p1), %s991_s19, 4294966272  ;;  %p19_p0 = scmp.ge.s32.totalorder %s1640_s21, 6   ;;  %s2159_s15 = smov %s1568_s16 }
 0x2fa   : > { %s2160_s16 = smov %s1572_s17  ;;  %s2161_s17 = smov %s1652_s24 }
 0x2fb   : > { %s2162_s18 = smov %s1640_s21  ;;  %21 = sbr.rel (!%p19_p0) target bundleno = 7 (0x7), region = 93 }
 0x300   :  { %997 = vsyncpa [#allocation3], 1 }
 0x301   :  { %999 = vsyncpa [#allocation3 + $0x1], 1 }
 0x302   :  { %1000 = vsyncpa [#allocation6], 1 }
 0x303   :  { %1001 = vsyncpa [#allocation9], 1 }
 0x304   :  { %1002 = vsyncpa [#allocation4], 1 }
 0x305   :  { %1004 = vsyncpa [#allocation4 + $0x1], 1 }

</bundles_post_ra>
